<compile_context>
chip_gen: v5e
topology: v5e:2x2
jax: 0.10.0
libtpu: 0.0.40
codegen_flags: <defaults>
</compile_context>

<pallas_src>
import functools

import jax
import jax.numpy as jnp
from jax.experimental import pallas as pl
from jax.experimental.pallas import tpu as pltpu

# Set to jnp.bfloat16 on v6e/v7x for the native MXU path + halved DMA bytes
# (perf review). Default f32 keeps exact PyTorch f32 forward semantics.
GEMM_DTYPE = jnp.float32

_VMEM_LIMIT_BYTES = 32 * 1024 * 1024


def _compiler_params():
    return pltpu.CompilerParams(
        dimension_semantics=("parallel",),
        vmem_limit_bytes=_VMEM_LIMIT_BYTES,
    )


def _choose_m_tile(m):
    """Largest lane-friendly tile (multiple of 128) that divides M."""
    for tm in (2048, 1024, 512, 256, 128):
        if m % tm == 0:
            return tm
    return m


# ----------------------------------------------------------------------------
# Layout glue (plain JAX): im2col for a 3x3 "same" conv in channel-first
# (C, N*H*W) layout, built ONCE per conv.  Row index order is (c, kh, kw),
# matching torch weight.reshape(Cout, Cin*9).
# ----------------------------------------------------------------------------
def _im2col_3x3(a_cm, n, h, w):
    c = a_cm.shape[0]
    a = a_cm.reshape(c, n, h, w)
    ap = jnp.pad(a, ((0, 0), (0, 0), (1, 1), (1, 1)))
    taps = [ap[:, :, kh:kh + h, kw:kw + w]
            for kh in range(3) for kw in range(3)]
    s = jnp.stack(taps, axis=1)                      # (C, 9, N, H, W)
    return s.reshape(c * 9, n * h * w)


# ----------------------------------------------------------------------------
# Kernel 1: 3x3 conv as one GEMM per M-tile, with bias and per-tile BatchNorm
# statistics (sum, sum-of-squares) computed as a free epilogue while the
# output tile is VMEM-resident.  Output (Cout, TM) is lane-dense.
# ----------------------------------------------------------------------------
def _conv_gemm_stats_kernel(slab_ref, w_ref, b_ref, y_ref, ssum_ref, ssq_ref):
    y = jnp.dot(w_ref[...], slab_ref[...], preferred_element_type=jnp.float32)
    y = y + b_ref[...]                               # (Cout, TM)
    y_ref[...] = y
    ssum_ref[...] = jnp.sum(y, axis=1, keepdims=True)[None]       # (1, Cout, 1)
    ssq_ref[...] = jnp.sum(y * y, axis=1, keepdims=True)[None]    # (1, Cout, 1)


def conv3x3_gemm(slab, w2, bias2d, m, cout):
    k = slab.shape[0]
    tm = _choose_m_tile(m)
    t = m // tm
    y, ssum, ssq = pl.pallas_call(
        _conv_gemm_stats_kernel,
        out_shape=[
            jax.ShapeDtypeStruct((cout, m), jnp.float32),
            jax.ShapeDtypeStruct((t, cout, 1), jnp.float32),
            jax.ShapeDtypeStruct((t, cout, 1), jnp.float32),
        ],
        grid=(t,),
        in_specs=[
            pl.BlockSpec((k, tm), lambda i: (0, i)),
            pl.BlockSpec((cout, k), lambda i: (0, 0)),
            pl.BlockSpec((cout, 1), lambda i: (0, 0)),
        ],
        out_specs=[
            pl.BlockSpec((cout, tm), lambda i: (0, i)),
            pl.BlockSpec((1, cout, 1), lambda i: (i, 0, 0)),
            pl.BlockSpec((1, cout, 1), lambda i: (i, 0, 0)),
        ],
        compiler_params=_compiler_params(),
    )(slab, w2, bias2d)
    return y, ssum, ssq


def _bn_scale_shift(ssum, ssq, m_total, gamma, beta, eps=1e-5):
    """Fold training-mode batch stats + affine params into scale/shift (f32)."""
    s = jnp.sum(ssum[:, :, 0], axis=0)
    q = jnp.sum(ssq[:, :, 0], axis=0)
    mean = s / m_total
    var = jnp.maximum(q / m_total - mean * mean, 0.0)    # biased variance
    scale = gamma * jax.lax.rsqrt(var + eps)
    shift = beta - mean * scale
    return scale.reshape(-1, 1), shift.reshape(-1, 1)


# ----------------------------------------------------------------------------
# Kernel 2: tiled elementwise BatchNorm (pre-folded scale/shift) + ReLU.
# ----------------------------------------------------------------------------
def _bn_relu_kernel(y_ref, s_ref, t_ref, o_ref):
    o_ref[...] = jnp.maximum(y_ref[...] * s_ref[...] + t_ref[...], 0.0)


def bn_relu(y, scale, shift):
    c, m = y.shape
    tm = _choose_m_tile(m)
    t = m // tm
    return pl.pallas_call(
        _bn_relu_kernel,
        out_shape=jax.ShapeDtypeStruct((c, m), jnp.float32),
        grid=(t,),
        in_specs=[
            pl.BlockSpec((c, tm), lambda i: (0, i)),
            pl.BlockSpec((c, 1), lambda i: (0, 0)),
            pl.BlockSpec((c, 1), lambda i: (0, 0)),
        ],
        out_specs=pl.BlockSpec((c, tm), lambda i: (0, i)),
        compiler_params=_compiler_params(),
    )(y, scale, shift)


# ----------------------------------------------------------------------------
# Kernel 3: fused BN2 + ReLU2 + ConvTranspose2d(k=2, s=2).  The transpose conv
# is a pure per-pixel GEMM: z (4*Cup, TM) = Wt (4*Cup, Cout) @ relu(bn(y2)).
# The second activation never touches HBM; output is lane-dense.
# ----------------------------------------------------------------------------
def _bn_relu_upconv_kernel(y_ref, s_ref, t_ref, w_ref, b_ref, o_ref):
    a = jnp.maximum(y_ref[...] * s_ref[...] + t_ref[...], 0.0)
    o_ref[...] = jnp.dot(w_ref[...], a.astype(w_ref.dtype),
                         preferred_element_type=jnp.float32) + b_ref[...]


def bn_relu_upconv(y, scale, shift, wt, bt):
    c, m = y.shape
    r = wt.shape[0]                      # 4 * Cup
    tm = _choose_m_tile(m)
    t = m // tm
    return pl.pallas_call(
        _bn_relu_upconv_kernel,
        out_shape=jax.ShapeDtypeStruct((r, m), jnp.float32),
        grid=(t,),
        in_specs=[
            pl.BlockSpec((c, tm), lambda i: (0, i)),
            pl.BlockSpec((c, 1), lambda i: (0, 0)),
            pl.BlockSpec((c, 1), lambda i: (0, 0)),
            pl.BlockSpec((r, c), lambda i: (0, 0)),
            pl.BlockSpec((r, 1), lambda i: (0, 0)),
        ],
        out_specs=pl.BlockSpec((r, tm), lambda i: (0, i)),
        compiler_params=_compiler_params(),
    )(y, scale, shift, wt, bt)


# ----------------------------------------------------------------------------
# UpConv forward (NCHW in, NCHW out)
# ----------------------------------------------------------------------------
def upconv_forward(x_nchw, params):
    n, cin, h, w = x_nchw.shape
    m = n * h * w
    cout = params["conv1_w"].shape[0]
    cup = params["up_w"].shape[1]

    # channel-first flattening: (Cin, M), M unrolled as (n, h, w)
    x_cm = jnp.transpose(x_nchw, (1, 0, 2, 3)).reshape(cin, m)

    # ----- conv1 (single GEMM) with BN stats in epilogue -----
    slab1 = _im2col_3x3(x_cm, n, h, w).astype(GEMM_DTYPE)
    w1 = params["conv1_w"].reshape(cout, cin * 9).astype(GEMM_DTYPE)
    b1 = params["conv1_b"].reshape(cout, 1)
    y1, ss1, sq1 = conv3x3_gemm(slab1, w1, b1, m, cout)
    sc1, sh1 = _bn_scale_shift(ss1, sq1, m, params["bn1_g"], params["bn1_b"])

    # ----- BN1 + ReLU1 (tiled elementwise) -----
    a1 = bn_relu(y1, sc1, sh1)

    # ----- conv2 (single GEMM) with BN stats in epilogue -----
    slab2 = _im2col_3x3(a1, n, h, w).astype(GEMM_DTYPE)
    w2 = params["conv2_w"].reshape(cout, cout * 9).astype(GEMM_DTYPE)
    b2 = params["conv2_b"].reshape(cout, 1)
    y2, ss2, sq2 = conv3x3_gemm(slab2, w2, b2, m, cout)
    sc2, sh2 = _bn_scale_shift(ss2, sq2, m, params["bn2_g"], params["bn2_b"])

    # ----- BN2 + ReLU2 + ConvTranspose2d(k=2, s=2) fused into one kernel -----
    # torch weight (Cin=Cout, Cup, 2, 2) -> rows ordered (kh, kw, co)
    wt = jnp.transpose(params["up_w"], (2, 3, 1, 0)).reshape(4 * cup, cout)
    wt = wt.astype(GEMM_DTYPE)
    bt = jnp.tile(params["up_b"], 4).reshape(4 * cup, 1)
    z = bn_relu_upconv(y2, sc2, sh2, wt, bt)

    # pixel-shuffle back to NCHW: out[n, co, 2h+kh, 2w+kw] = z[kh, kw, co, n, h, w]
    # TODO(synk): fold this stride-2 interleave into the kernel's store pattern.
    z = z.reshape(2, 2, cup, n, h, w)
    z = jnp.transpose(z, (3, 2, 4, 0, 5, 1)).reshape(n, cup, 2 * h, 2 * w)
    return z


def init_params(key, in_channels, out_channels):
    ks = jax.random.split(key, 10)
    co, ci = out_channels, in_channels
    return {
        "conv1_w": 0.1 * jax.random.normal(ks[0], (co, ci, 3, 3), jnp.float32),
        "conv1_b": 0.1 * jax.random.normal(ks[1], (co,), jnp.float32),
        "bn1_g":   1.0 + 0.1 * jax.random.normal(ks[2], (co,), jnp.float32),
        "bn1_b":   0.1 * jax.random.normal(ks[3], (co,), jnp.float32),
        "conv2_w": 0.1 * jax.random.normal(ks[4], (co, co, 3, 3), jnp.float32),
        "conv2_b": 0.1 * jax.random.normal(ks[5], (co,), jnp.float32),
        "bn2_g":   1.0 + 0.1 * jax.random.normal(ks[6], (co,), jnp.float32),
        "bn2_b":   0.1 * jax.random.normal(ks[7], (co,), jnp.float32),
        # ConvTranspose2d(out_channels, out_channels//2, 2, 2):
        # torch weight shape (in_channels, out_channels, kH, kW)
        "up_w":    0.1 * jax.random.normal(ks[8], (co, co // 2, 2, 2), jnp.float32),
        "up_b":    0.1 * jax.random.normal(ks[9], (co // 2,), jnp.float32),
    }


if __name__ == "__main__":
    key = jax.random.PRNGKey(0)
    k_params, k_x = jax.random.split(key)

    N, Cin, H, W = 2, 4, 16, 16
    Cout = 8

    params = init_params(k_params, Cin, Cout)
    x = jax.random.normal(k_x, (N, Cin, H, W), jnp.float32)       # NCHW input

    fwd = jax.jit(functools.partial(upconv_forward, params=params))
    out = fwd(x)
    jax.block_until_ready(out)

    assert out.shape == (N, Cout // 2, 2 * H, 2 * W), out.shape
    assert bool(jnp.all(jnp.isfinite(out)))
    print("KERNEL_OK")
</pallas_src>

<mosaic_0001>
module attributes {stable_mosaic.version = 11 : i64} {
  func.func @_conv_gemm_stats_kernel(%arg0: i32, %arg1: memref<36x512xf32, #tpu.memory_space<vmem>>, %arg2: memref<8x36xf32, #tpu.memory_space<vmem>>, %arg3: memref<8x1xf32, #tpu.memory_space<vmem>>, %arg4: memref<8x512xf32, #tpu.memory_space<vmem>>, %arg5: memref<1x8x1xf32, #tpu.memory_space<vmem>>, %arg6: memref<1x8x1xf32, #tpu.memory_space<vmem>>) attributes {dimension_semantics = [#tpu.dimension_semantics<parallel>], iteration_bounds = array<i64: 1>, scalar_prefetch = 0 : i64, scratch_operands = 0 : i64, tpu.core_type = #tpu.core_type<tc>, window_params = [{transform_indices = @transform_0, window_bounds = array<i64: 36, 512>}, {pipeline_mode = #tpu.pipeline_mode<synchronous>, transform_indices = @transform_1, window_bounds = array<i64: 8, 36>}, {pipeline_mode = #tpu.pipeline_mode<synchronous>, transform_indices = @transform_2, window_bounds = array<i64: 8, 1>}, {transform_indices = @transform_3, window_bounds = array<i64: 8, 512>}, {transform_indices = @transform_4, window_bounds = array<i64: 1, 8, 1>}, {transform_indices = @transform_5, window_bounds = array<i64: 1, 8, 1>}]} {
    %c0 = arith.constant 0 : index
    %c0_0 = arith.constant 0 : index
    %0 = vector.load %arg2[%c0, %c0_0] : memref<8x36xf32, #tpu.memory_space<vmem>>, vector<8x36xf32>
    %c0_1 = arith.constant 0 : index
    %c0_2 = arith.constant 0 : index
    %1 = vector.load %arg1[%c0_1, %c0_2] : memref<36x512xf32, #tpu.memory_space<vmem>>, vector<36x512xf32>
    %cst = arith.constant dense<0.000000e+00> : vector<8x512xf32>
    %2 = tpu.matmul %0, %1, %cst {dimension_numbers = #tpu.dot_dimension_numbers<[1], [0], [0], [1], [0, 0, 1, 1], [], []>} : vector<8x36xf32>, vector<36x512xf32>, vector<8x512xf32> -> vector<8x512xf32>
    %c0_3 = arith.constant 0 : index
    %c0_4 = arith.constant 0 : index
    %3 = vector.load %arg3[%c0_3, %c0_4] : memref<8x1xf32, #tpu.memory_space<vmem>>, vector<8x1xf32>
    %4 = vector.broadcast %3 : vector<8x1xf32> to vector<8x512xf32>
    %5 = arith.addf %2, %4 : vector<8x512xf32>
    %c0_5 = arith.constant 0 : index
    %c0_6 = arith.constant 0 : index
    %6 = vector.load %arg4[%c0_5, %c0_6] : memref<8x512xf32, #tpu.memory_space<vmem>>, vector<8x512xf32>
    tpu.vector_store %arg4[%c0_5, %c0_6], %5 {strides = array<i32>} : memref<8x512xf32, #tpu.memory_space<vmem>>, vector<8x512xf32>,
    %cst_7 = arith.constant dense<0.000000e+00> : vector<8xf32>
    %7 = vector.multi_reduction <add>, %5, %cst_7 [1] : vector<8x512xf32> to vector<8xf32>
    %8 = vector.shape_cast %7 : vector<8xf32> to vector<8x1xf32>
    %9 = vector.shape_cast %8 : vector<8x1xf32> to vector<1x8x1xf32>
    %c0_8 = arith.constant 0 : index
    %c0_9 = arith.constant 0 : index
    %c0_10 = arith.constant 0 : index
    %10 = vector.load %arg5[%c0_8, %c0_9, %c0_10] : memref<1x8x1xf32, #tpu.memory_space<vmem>>, vector<1x8x1xf32>
    tpu.vector_store %arg5[%c0_8, %c0_9, %c0_10], %9 {strides = array<i32>} : memref<1x8x1xf32, #tpu.memory_space<vmem>>, vector<1x8x1xf32>,
    %11 = arith.mulf %5, %5 : vector<8x512xf32>
    %cst_11 = arith.constant dense<0.000000e+00> : vector<8xf32>
    %12 = vector.multi_reduction <add>, %11, %cst_11 [1] : vector<8x512xf32> to vector<8xf32>
    %13 = vector.shape_cast %12 : vector<8xf32> to vector<8x1xf32>
    %14 = vector.shape_cast %13 : vector<8x1xf32> to vector<1x8x1xf32>
    %c0_12 = arith.constant 0 : index
    %c0_13 = arith.constant 0 : index
    %c0_14 = arith.constant 0 : index
    %15 = vector.load %arg6[%c0_12, %c0_13, %c0_14] : memref<1x8x1xf32, #tpu.memory_space<vmem>>, vector<1x8x1xf32>
    tpu.vector_store %arg6[%c0_12, %c0_13, %c0_14], %14 {strides = array<i32>} : memref<1x8x1xf32, #tpu.memory_space<vmem>>, vector<1x8x1xf32>,
    return
  }
  func.func @transform_0(%arg0: i32) -> (i32, i32) {
    %c0_i32 = arith.constant 0 : i32
    %c0_i32_0 = arith.constant 0 : i32
    return %c0_i32, %arg0 : i32, i32
  }
  func.func @transform_1(%arg0: i32) -> (i32, i32) {
    %c0_i32 = arith.constant 0 : i32
    %c0_i32_0 = arith.constant 0 : i32
    %c0_i32_1 = arith.constant 0 : i32
    return %c0_i32, %c0_i32_0 : i32, i32
  }
  func.func @transform_2(%arg0: i32) -> (i32, i32) {
    %c0_i32 = arith.constant 0 : i32
    %c0_i32_0 = arith.constant 0 : i32
    %c0_i32_1 = arith.constant 0 : i32
    return %c0_i32, %c0_i32_0 : i32, i32
  }
  func.func @transform_3(%arg0: i32) -> (i32, i32) {
    %c0_i32 = arith.constant 0 : i32
    %c0_i32_0 = arith.constant 0 : i32
    return %c0_i32, %arg0 : i32, i32
  }
  func.func @transform_4(%arg0: i32) -> (i32, i32, i32) {
    %c0_i32 = arith.constant 0 : i32
    %c0_i32_0 = arith.constant 0 : i32
    %c0_i32_1 = arith.constant 0 : i32
    return %arg0, %c0_i32, %c0_i32_0 : i32, i32, i32
  }
  func.func @transform_5(%arg0: i32) -> (i32, i32, i32) {
    %c0_i32 = arith.constant 0 : i32
    %c0_i32_0 = arith.constant 0 : i32
    %c0_i32_1 = arith.constant 0 : i32
    return %arg0, %c0_i32, %c0_i32_0 : i32, i32, i32
  }
}

module attributes {stable_mosaic.version = 11 : i64} {
  func.func @_bn_relu_kernel(%arg0: i32, %arg1: memref<8x512xf32, #tpu.memory_space<vmem>>, %arg2: memref<8x1xf32, #tpu.memory_space<vmem>>, %arg3: memref<8x1xf32, #tpu.memory_space<vmem>>, %arg4: memref<8x512xf32, #tpu.memory_space<vmem>>) attributes {dimension_semantics = [#tpu.dimension_semantics<parallel>], iteration_bounds = array<i64: 1>, scalar_prefetch = 0 : i64, scratch_operands = 0 : i64, tpu.core_type = #tpu.core_type<tc>, window_params = [{transform_indices = @transform_0, window_bounds = array<i64: 8, 512>}, {pipeline_mode = #tpu.pipeline_mode<synchronous>, transform_indices = @transform_1, window_bounds = array<i64: 8, 1>}, {pipeline_mode = #tpu.pipeline_mode<synchronous>, transform_indices = @transform_2, window_bounds = array<i64: 8, 1>}, {transform_indices = @transform_3, window_bounds = array<i64: 8, 512>}]} {
    %c0 = arith.constant 0 : index
    %c0_0 = arith.constant 0 : index
    %0 = vector.load %arg1[%c0, %c0_0] : memref<8x512xf32, #tpu.memory_space<vmem>>, vector<8x512xf32>
    %c0_1 = arith.constant 0 : index
    %c0_2 = arith.constant 0 : index
    %1 = vector.load %arg2[%c0_1, %c0_2] : memref<8x1xf32, #tpu.memory_space<vmem>>, vector<8x1xf32>
    %2 = vector.broadcast %1 : vector<8x1xf32> to vector<8x512xf32>
    %3 = arith.mulf %0, %2 : vector<8x512xf32>
    %c0_3 = arith.constant 0 : index
    %c0_4 = arith.constant 0 : index
    %4 = vector.load %arg3[%c0_3, %c0_4] : memref<8x1xf32, #tpu.memory_space<vmem>>, vector<8x1xf32>
    %5 = vector.broadcast %4 : vector<8x1xf32> to vector<8x512xf32>
    %6 = arith.addf %3, %5 : vector<8x512xf32>
    %cst = arith.constant 0.000000e+00 : f32
    %7 = vector.broadcast %cst : f32 to vector<8x512xf32>
    %8 = arith.maximumf %6, %7 : vector<8x512xf32>
    %c0_5 = arith.constant 0 : index
    %c0_6 = arith.constant 0 : index
    %9 = vector.load %arg4[%c0_5, %c0_6] : memref<8x512xf32, #tpu.memory_space<vmem>>, vector<8x512xf32>
    tpu.vector_store %arg4[%c0_5, %c0_6], %8 {strides = array<i32>} : memref<8x512xf32, #tpu.memory_space<vmem>>, vector<8x512xf32>,
    return
  }
  func.func @transform_0(%arg0: i32) -> (i32, i32) {
    %c0_i32 = arith.constant 0 : i32
    %c0_i32_0 = arith.constant 0 : i32
    return %c0_i32, %arg0 : i32, i32
  }
  func.func @transform_1(%arg0: i32) -> (i32, i32) {
    %c0_i32 = arith.constant 0 : i32
    %c0_i32_0 = arith.constant 0 : i32
    %c0_i32_1 = arith.constant 0 : i32
    return %c0_i32, %c0_i32_0 : i32, i32
  }
  func.func @transform_2(%arg0: i32) -> (i32, i32) {
    %c0_i32 = arith.constant 0 : i32
    %c0_i32_0 = arith.constant 0 : i32
    %c0_i32_1 = arith.constant 0 : i32
    return %c0_i32, %c0_i32_0 : i32, i32
  }
  func.func @transform_3(%arg0: i32) -> (i32, i32) {
    %c0_i32 = arith.constant 0 : i32
    %c0_i32_0 = arith.constant 0 : i32
    return %c0_i32, %arg0 : i32, i32
  }
}

module attributes {stable_mosaic.version = 11 : i64} {
  func.func @_conv_gemm_stats_kernel(%arg0: i32, %arg1: memref<72x512xf32, #tpu.memory_space<vmem>>, %arg2: memref<8x72xf32, #tpu.memory_space<vmem>>, %arg3: memref<8x1xf32, #tpu.memory_space<vmem>>, %arg4: memref<8x512xf32, #tpu.memory_space<vmem>>, %arg5: memref<1x8x1xf32, #tpu.memory_space<vmem>>, %arg6: memref<1x8x1xf32, #tpu.memory_space<vmem>>) attributes {dimension_semantics = [#tpu.dimension_semantics<parallel>], iteration_bounds = array<i64: 1>, scalar_prefetch = 0 : i64, scratch_operands = 0 : i64, tpu.core_type = #tpu.core_type<tc>, window_params = [{transform_indices = @transform_0, window_bounds = array<i64: 72, 512>}, {pipeline_mode = #tpu.pipeline_mode<synchronous>, transform_indices = @transform_1, window_bounds = array<i64: 8, 72>}, {pipeline_mode = #tpu.pipeline_mode<synchronous>, transform_indices = @transform_2, window_bounds = array<i64: 8, 1>}, {transform_indices = @transform_3, window_bounds = array<i64: 8, 512>}, {transform_indices = @transform_4, window_bounds = array<i64: 1, 8, 1>}, {transform_indices = @transform_5, window_bounds = array<i64: 1, 8, 1>}]} {
    %c0 = arith.constant 0 : index
    %c0_0 = arith.constant 0 : index
    %0 = vector.load %arg2[%c0, %c0_0] : memref<8x72xf32, #tpu.memory_space<vmem>>, vector<8x72xf32>
    %c0_1 = arith.constant 0 : index
    %c0_2 = arith.constant 0 : index
    %1 = vector.load %arg1[%c0_1, %c0_2] : memref<72x512xf32, #tpu.memory_space<vmem>>, vector<72x512xf32>
    %cst = arith.constant dense<0.000000e+00> : vector<8x512xf32>
    %2 = tpu.matmul %0, %1, %cst {dimension_numbers = #tpu.dot_dimension_numbers<[1], [0], [0], [1], [0, 0, 1, 1], [], []>} : vector<8x72xf32>, vector<72x512xf32>, vector<8x512xf32> -> vector<8x512xf32>
    %c0_3 = arith.constant 0 : index
    %c0_4 = arith.constant 0 : index
    %3 = vector.load %arg3[%c0_3, %c0_4] : memref<8x1xf32, #tpu.memory_space<vmem>>, vector<8x1xf32>
    %4 = vector.broadcast %3 : vector<8x1xf32> to vector<8x512xf32>
    %5 = arith.addf %2, %4 : vector<8x512xf32>
    %c0_5 = arith.constant 0 : index
    %c0_6 = arith.constant 0 : index
    %6 = vector.load %arg4[%c0_5, %c0_6] : memref<8x512xf32, #tpu.memory_space<vmem>>, vector<8x512xf32>
    tpu.vector_store %arg4[%c0_5, %c0_6], %5 {strides = array<i32>} : memref<8x512xf32, #tpu.memory_space<vmem>>, vector<8x512xf32>,
    %cst_7 = arith.constant dense<0.000000e+00> : vector<8xf32>
    %7 = vector.multi_reduction <add>, %5, %cst_7 [1] : vector<8x512xf32> to vector<8xf32>
    %8 = vector.shape_cast %7 : vector<8xf32> to vector<8x1xf32>
    %9 = vector.shape_cast %8 : vector<8x1xf32> to vector<1x8x1xf32>
    %c0_8 = arith.constant 0 : index
    %c0_9 = arith.constant 0 : index
    %c0_10 = arith.constant 0 : index
    %10 = vector.load %arg5[%c0_8, %c0_9, %c0_10] : memref<1x8x1xf32, #tpu.memory_space<vmem>>, vector<1x8x1xf32>
    tpu.vector_store %arg5[%c0_8, %c0_9, %c0_10], %9 {strides = array<i32>} : memref<1x8x1xf32, #tpu.memory_space<vmem>>, vector<1x8x1xf32>,
    %11 = arith.mulf %5, %5 : vector<8x512xf32>
    %cst_11 = arith.constant dense<0.000000e+00> : vector<8xf32>
    %12 = vector.multi_reduction <add>, %11, %cst_11 [1] : vector<8x512xf32> to vector<8xf32>
    %13 = vector.shape_cast %12 : vector<8xf32> to vector<8x1xf32>
    %14 = vector.shape_cast %13 : vector<8x1xf32> to vector<1x8x1xf32>
    %c0_12 = arith.constant 0 : index
    %c0_13 = arith.constant 0 : index
    %c0_14 = arith.constant 0 : index
    %15 = vector.load %arg6[%c0_12, %c0_13, %c0_14] : memref<1x8x1xf32, #tpu.memory_space<vmem>>, vector<1x8x1xf32>
    tpu.vector_store %arg6[%c0_12, %c0_13, %c0_14], %14 {strides = array<i32>} : memref<1x8x1xf32, #tpu.memory_space<vmem>>, vector<1x8x1xf32>,
    return
  }
  func.func @transform_0(%arg0: i32) -> (i32, i32) {
    %c0_i32 = arith.constant 0 : i32
    %c0_i32_0 = arith.constant 0 : i32
    return %c0_i32, %arg0 : i32, i32
  }
  func.func @transform_1(%arg0: i32) -> (i32, i32) {
    %c0_i32 = arith.constant 0 : i32
    %c0_i32_0 = arith.constant 0 : i32
    %c0_i32_1 = arith.constant 0 : i32
    return %c0_i32, %c0_i32_0 : i32, i32
  }
  func.func @transform_2(%arg0: i32) -> (i32, i32) {
    %c0_i32 = arith.constant 0 : i32
    %c0_i32_0 = arith.constant 0 : i32
    %c0_i32_1 = arith.constant 0 : i32
    return %c0_i32, %c0_i32_0 : i32, i32
  }
  func.func @transform_3(%arg0: i32) -> (i32, i32) {
    %c0_i32 = arith.constant 0 : i32
    %c0_i32_0 = arith.constant 0 : i32
    return %c0_i32, %arg0 : i32, i32
  }
  func.func @transform_4(%arg0: i32) -> (i32, i32, i32) {
    %c0_i32 = arith.constant 0 : i32
    %c0_i32_0 = arith.constant 0 : i32
    %c0_i32_1 = arith.constant 0 : i32
    return %arg0, %c0_i32, %c0_i32_0 : i32, i32, i32
  }
  func.func @transform_5(%arg0: i32) -> (i32, i32, i32) {
    %c0_i32 = arith.constant 0 : i32
    %c0_i32_0 = arith.constant 0 : i32
    %c0_i32_1 = arith.constant 0 : i32
    return %arg0, %c0_i32, %c0_i32_0 : i32, i32, i32
  }
}

module attributes {stable_mosaic.version = 11 : i64} {
  func.func @_bn_relu_upconv_kernel(%arg0: i32, %arg1: memref<8x512xf32, #tpu.memory_space<vmem>>, %arg2: memref<8x1xf32, #tpu.memory_space<vmem>>, %arg3: memref<8x1xf32, #tpu.memory_space<vmem>>, %arg4: memref<16x8xf32, #tpu.memory_space<vmem>>, %arg5: memref<16x1xf32, #tpu.memory_space<vmem>>, %arg6: memref<16x512xf32, #tpu.memory_space<vmem>>) attributes {dimension_semantics = [#tpu.dimension_semantics<parallel>], iteration_bounds = array<i64: 1>, scalar_prefetch = 0 : i64, scratch_operands = 0 : i64, tpu.core_type = #tpu.core_type<tc>, window_params = [{transform_indices = @transform_0, window_bounds = array<i64: 8, 512>}, {pipeline_mode = #tpu.pipeline_mode<synchronous>, transform_indices = @transform_1, window_bounds = array<i64: 8, 1>}, {pipeline_mode = #tpu.pipeline_mode<synchronous>, transform_indices = @transform_2, window_bounds = array<i64: 8, 1>}, {pipeline_mode = #tpu.pipeline_mode<synchronous>, transform_indices = @transform_3, window_bounds = array<i64: 16, 8>}, {pipeline_mode = #tpu.pipeline_mode<synchronous>, transform_indices = @transform_4, window_bounds = array<i64: 16, 1>}, {transform_indices = @transform_5, window_bounds = array<i64: 16, 512>}]} {
    %c0 = arith.constant 0 : index
    %c0_0 = arith.constant 0 : index
    %0 = vector.load %arg1[%c0, %c0_0] : memref<8x512xf32, #tpu.memory_space<vmem>>, vector<8x512xf32>
    %c0_1 = arith.constant 0 : index
    %c0_2 = arith.constant 0 : index
    %1 = vector.load %arg2[%c0_1, %c0_2] : memref<8x1xf32, #tpu.memory_space<vmem>>, vector<8x1xf32>
    %2 = vector.broadcast %1 : vector<8x1xf32> to vector<8x512xf32>
    %3 = arith.mulf %0, %2 : vector<8x512xf32>
    %c0_3 = arith.constant 0 : index
    %c0_4 = arith.constant 0 : index
    %4 = vector.load %arg3[%c0_3, %c0_4] : memref<8x1xf32, #tpu.memory_space<vmem>>, vector<8x1xf32>
    %5 = vector.broadcast %4 : vector<8x1xf32> to vector<8x512xf32>
    %6 = arith.addf %3, %5 : vector<8x512xf32>
    %cst = arith.constant 0.000000e+00 : f32
    %7 = vector.broadcast %cst : f32 to vector<8x512xf32>
    %8 = arith.maximumf %6, %7 : vector<8x512xf32>
    %c0_5 = arith.constant 0 : index
    %c0_6 = arith.constant 0 : index
    %9 = vector.load %arg4[%c0_5, %c0_6] : memref<16x8xf32, #tpu.memory_space<vmem>>, vector<16x8xf32>
    %cst_7 = arith.constant dense<0.000000e+00> : vector<16x512xf32>
    %10 = tpu.matmul %9, %8, %cst_7 {dimension_numbers = #tpu.dot_dimension_numbers<[1], [0], [0], [1], [0, 0, 1, 1], [], []>} : vector<16x8xf32>, vector<8x512xf32>, vector<16x512xf32> -> vector<16x512xf32>
    %c0_8 = arith.constant 0 : index
    %c0_9 = arith.constant 0 : index
    %11 = vector.load %arg5[%c0_8, %c0_9] : memref<16x1xf32, #tpu.memory_space<vmem>>, vector<16x1xf32>
    %12 = vector.broadcast %11 : vector<16x1xf32> to vector<16x512xf32>
    %13 = arith.addf %10, %12 : vector<16x512xf32>
    %c0_10 = arith.constant 0 : index
    %c0_11 = arith.constant 0 : index
    %14 = vector.load %arg6[%c0_10, %c0_11] : memref<16x512xf32, #tpu.memory_space<vmem>>, vector<16x512xf32>
    tpu.vector_store %arg6[%c0_10, %c0_11], %13 {strides = array<i32>} : memref<16x512xf32, #tpu.memory_space<vmem>>, vector<16x512xf32>,
    return
  }
  func.func @transform_0(%arg0: i32) -> (i32, i32) {
    %c0_i32 = arith.constant 0 : i32
    %c0_i32_0 = arith.constant 0 : i32
    return %c0_i32, %arg0 : i32, i32
  }
  func.func @transform_1(%arg0: i32) -> (i32, i32) {
    %c0_i32 = arith.constant 0 : i32
    %c0_i32_0 = arith.constant 0 : i32
    %c0_i32_1 = arith.constant 0 : i32
    return %c0_i32, %c0_i32_0 : i32, i32
  }
  func.func @transform_2(%arg0: i32) -> (i32, i32) {
    %c0_i32 = arith.constant 0 : i32
    %c0_i32_0 = arith.constant 0 : i32
    %c0_i32_1 = arith.constant 0 : i32
    return %c0_i32, %c0_i32_0 : i32, i32
  }
  func.func @transform_3(%arg0: i32) -> (i32, i32) {
    %c0_i32 = arith.constant 0 : i32
    %c0_i32_0 = arith.constant 0 : i32
    %c0_i32_1 = arith.constant 0 : i32
    return %c0_i32, %c0_i32_0 : i32, i32
  }
  func.func @transform_4(%arg0: i32) -> (i32, i32) {
    %c0_i32 = arith.constant 0 : i32
    %c0_i32_0 = arith.constant 0 : i32
    %c0_i32_1 = arith.constant 0 : i32
    return %c0_i32, %c0_i32_0 : i32, i32
  }
  func.func @transform_5(%arg0: i32) -> (i32, i32) {
    %c0_i32 = arith.constant 0 : i32
    %c0_i32_0 = arith.constant 0 : i32
    return %c0_i32, %arg0 : i32, i32
  }
}

</mosaic_0001>

<bundles_post_ra>
// kernel: upconv_forward.5
= control target key start
LH: loop header
LB: loop body
LE: loop exit
PB: predicated region body
PF: predicated region fallthrough
CT: control target
= control target key end

     0   :  { %v52_v0 = vmov 0   ;;  %s103_s1 = inlined_call_operand.vmem [shape: f32[8,1], index: 1, kind: input, shape index: {}]   ;;  %s104_s2 = inlined_call_operand.vmem [shape: f32[8,1], index: 2, kind: input, shape index: {}]   ;;  %s105_s0 = inlined_call_operand.vmem [shape: f32[8,512], index: 0, kind: input, shape index: {}]   ;;  %s106_s3 = inlined_call_operand.vmem [shape: f32[8,512], index: 3, kind: output, shape index: {}]  }
   0x1   :  { %51 = vset.pattern.permute.xlu0 %v52_v0  ;;  %v18_v1 = vld [vmem:[%s103_s1] sm:$0xff]  ;;  %v15_v5 = vld [vmem:[%s105_s0 + $0x8] sm:$0xff]  ;;  %v16_v6 = vld [vmem:[%s105_s0 + $0x10] sm:$0xff] }
   0x2   :  { %21 = vperm.xlu0 %51, %v18_v1   ;;  %v28_v2 = vld [vmem:[%s104_s2] sm:$0xff]  ;;  %v17_v7 = vld [vmem:[%s105_s0 + $0x18] sm:$0xff] }
   0x3   :  { %v14_v4 = vld [vmem:[%s105_s0] sm:$0xff] }
   0xa   :  { %31 = vperm.xlu0 %51, %v28_v2  }
  0x74   :  { %v22_v3 = vpop.permute.xlu0 %21 }
  0x75   :  { %v24_v8 = vmul.f32 %v22_v3, %v14_v4  ;;  %v25_v9 = vmul.f32 %v22_v3, %v15_v5  ;;  %v26_v10 = vmul.f32 %v22_v3, %v16_v6  ;;  %v27_v11 = vmul.f32 %v22_v3, %v17_v7 }
  0x7c   :  { %v32_v12 = vpop.permute.xlu0 %31 }
  0x7d   :  { %v34_v13 = vadd.f32 %v32_v12, %v24_v8  ;;  %v35_v14 = vadd.f32 %v32_v12, %v25_v9  ;;  %v36_v15 = vadd.f32 %v32_v12, %v26_v10  ;;  %v37_v16 = vadd.f32 %v32_v12, %v27_v11 }
  0x7f   :  { %v38_v17 = vmax.f32 %v34_v13, 0.0  ;;  %v39_v18 = vmax.f32 %v35_v14, 0.0  ;;  %v40_v19 = vmax.f32 %v36_v15, 0.0  ;;  %v41_v20 = vmax.f32 %v37_v16, 0.0 }
  0x81   :  { %42 = vst [vmem:[%s106_s3] sm:$0xff] %v38_v17 }
  0x82   :  { %43 = vst [vmem:[%s106_s3 + $0x8] sm:$0xff] %v39_v18 }
  0x83   :  { %44 = vst [vmem:[%s106_s3 + $0x10] sm:$0xff] %v40_v19 }
  0x84   :  { %45 = vst [vmem:[%s106_s3 + $0x18] sm:$0xff] %v41_v20 }

// kernel: upconv_forward.4
= control target key start
LH: loop header
LB: loop body
LE: loop exit
PB: predicated region body
PF: predicated region fallthrough
CT: control target
= control target key end

     0   :  { %vm48_vm0 = vcmask 1043456   ;;  %v184_v3 = vmov 0   ;;  %vm44_vm1 = vcmask 293888   ;;  %vm150_vm2 = vcmask 7168   ;;  %s299_s0 = inlined_call_operand.vmem [shape: f32[36,512], index: 0, kind: input, shape index: {}]   ;;  %s300_s1 = inlined_call_operand.vmem [shape: f32[8,36], index: 1, kind: input, shape index: {}]   ;;  %s301_s2 = inlined_call_operand.vmem [shape: f32[8,1], index: 2, kind: input, shape index: {}]   ;;  %s302_s3 = inlined_call_operand.vmem [shape: f32[8,512], index: 3, kind: output, shape index: {0}]   ;;  %s303_s4 = inlined_call_operand.vmem [shape: f32[1,8,1], index: 4, kind: output, shape index: {1}]   ;;  %s304_s5 = inlined_call_operand.vmem [shape: f32[1,8,1], index: 5, kind: output, shape index: {2}]  }
   0x1   :  { %v36_v0 = vld [vmem:[%s299_s0 + $0x90] sm:$0xf]  ;;  %v37_v1 = vld [vmem:[%s299_s0 + $0x98] sm:$0xf]  ;;  %183 = vset.pattern.permute.xlu0 %v184_v3  ;;  %v34_v5 = vld [vmem:[%s299_s0 + $0x80] sm:$0xf] }
   0x2   :  { %v32_v2 = vld [vmem:[%s299_s0 + $0x70] sm:$0xff]  ;;  %178 = vmatpush.msk.msra.mxu2 %vm48_vm0, %v36_v0  ;;  %180 = vmatpush.msk.msra.mxu3 %vm48_vm0, %v37_v1  ;;  %v33_v4 = vld [vmem:[%s299_s0 + $0x78] sm:$0xff]  ;;  %v35_v6 = vld [vmem:[%s299_s0 + $0x88] sm:$0xf] }
   0x3   :  { %174 = vmatpush.msk.msra.mxu0 %vm48_vm0, %v34_v5  ;;  %176 = vmatpush.msk.msra.mxu1 %vm48_vm0, %v35_v6  ;;  %v28_v7 = vld [vmem:[%s299_s0 + $0x50] sm:$0xff]  ;;  %v29_v8 = vld [vmem:[%s299_s0 + $0x58] sm:$0xff]  ;;  %v30_v9 = vld [vmem:[%s299_s0 + $0x60] sm:$0xff] }
   0x4   :  { %113 = vmatpush.msra.mxu2 %v32_v2  ;;  %133 = vmatpush.msra.mxu3 %v33_v4  ;;  %v31_v10 = vld [vmem:[%s299_s0 + $0x68] sm:$0xff]  ;;  %v24_v11 = vld [vmem:[%s299_s0 + $0x30] sm:$0xff]  ;;  %v25_v12 = vld [vmem:[%s299_s0 + $0x38] sm:$0xff] }
   0x5   :  { %73 = vmatpush.msra.mxu0 %v30_v9  ;;  %93 = vmatpush.msra.mxu1 %v31_v10  ;;  %v26_v13 = vld [vmem:[%s299_s0 + $0x40] sm:$0xff]  ;;  %v27_v14 = vld [vmem:[%s299_s0 + $0x48] sm:$0xff]  ;;  %v20_v16 = vld [vmem:[%s299_s0 + $0x10] sm:$0xff] }
   0x6   :  { %114 = vmatpush.msra.mxu2 %v28_v7  ;;  %134 = vmatpush.msra.mxu3 %v29_v8  ;;  %v22_v15 = vld [vmem:[%s299_s0 + $0x20] sm:$0xff]  ;;  %v21_v17 = vld [vmem:[%s299_s0 + $0x18] sm:$0xff]  ;;  %v23_v18 = vld [vmem:[%s299_s0 + $0x28] sm:$0xff] }
   0x7   :  { %74 = vmatpush.msra.mxu0 %v26_v13  ;;  %94 = vmatpush.msra.mxu1 %v27_v14  ;;  %v17_v19 = vld [vmem:[%s300_s1] sm:$0xff]  ;;  %v19_v21 = vld [vmem:[%s299_s0 + $0x8] sm:$0xff] }
   0x8   :  { %115 = vmatpush.msra.mxu2 %v24_v11  ;;  %135 = vmatpush.msra.mxu3 %v25_v12  ;;  %v18_v20 = vld [vmem:[%s299_s0] sm:$0xff] }
   0x9   :  { %75 = vmatpush.msra.mxu0 %v22_v15  ;;  %95 = vmatpush.msra.mxu1 %v23_v18  ;;  %v38_v22 = vld [vmem:[%s301_s2] sm:$0xff] }
   0xa   :  { %116 = vmatpush.msra.mxu2 %v20_v16  ;;  %136 = vmatpush.msra.mxu3 %v21_v17 }
   0xb   :  { %179 = vmatmul.msk.f32.vlgmr.msra.gmra.mxu2 %vm44_vm1, %v17_v19  ;;  %181 = vmatmul.msk.f32.vlgmr.msra.gmra.mxu3 %vm44_vm1, %v17_v19 }
   0xc   :  { %76 = vmatpush.msra.mxu0 %v18_v20  ;;  %96 = vmatpush.msra.mxu1 %v19_v21 }
   0xd   :  { %175 = vmatmul.msk.f32.vlgmr.msra.gmra.mxu0 %vm44_vm1, %v17_v19  ;;  %177 = vmatmul.msk.f32.vlgmr.msra.gmra.mxu1 %vm44_vm1, %v17_v19 }
   0xe   :  { %41 = vperm.xlu0 %183, %v38_v22  }
  0x80   :  { %v42_v23 = vpop.permute.xlu0 %41 }
  0x8a   :  { %v78_v24 = vpop.f32.mrf.mxu0  ;;  %v98_v25 = vpop.f32.mrf.mxu1 }
  0x8b   :  { %v79_v26 = vadd.f32 %v78_v24, %v42_v23  ;;  %v99_v27 = vadd.f32 %v98_v25, %v42_v23 }
  0x8d   :  { %141 = vst [vmem:[%s302_s3] sm:$0xff] %v79_v26  ;;  %v152_v28 = vmul.f32 %v79_v26, %v79_v26  ;;  %v145_v29 = vadd.f32 %v99_v27, %v79_v26  ;;  %v153_v30 = vmul.f32 %v99_v27, %v99_v27 }
  0x8e   :  { %142 = vst [vmem:[%s302_s3 + $0x8] sm:$0xff] %v99_v27  ;;  %v118_v31 = vpop.f32.mrf.mxu2  ;;  %v138_v32 = vpop.f32.mrf.mxu3 }
  0x8f   :  { %v119_v33 = vadd.f32 %v118_v31, %v42_v23  ;;  %v139_v34 = vadd.f32 %v138_v32, %v42_v23  ;;  %v156_v35 = vadd.f32 %v153_v30, %v152_v28 }
  0x91   :  { %143 = vst [vmem:[%s302_s3 + $0x10] sm:$0xff] %v119_v33  ;;  %v146_v36 = vadd.f32 %v145_v29, %v119_v33  ;;  %v154_v37 = vmul.f32 %v119_v33, %v119_v33  ;;  %v155_v39 = vmul.f32 %v139_v34, %v139_v34 }
  0x92   :  { %144 = vst [vmem:[%s302_s3 + $0x18] sm:$0xff] %v139_v34 }
  0x93   :  { %v147_v38 = vadd.f32 %v146_v36, %v139_v34  ;;  %v157_v40 = vadd.f32 %v156_v35, %v154_v37 }
  0x95   :  { %148 = vadd.xlane.f32.xlu0 %v147_v38  ;;  %v158_v41 = vadd.f32 %v157_v40, %v155_v39 }
  0x97   :  { %159 = vadd.xlane.f32.xlu1 %v158_v41 }
 0x108   :  { %v149_v42 = vpop.xlane.xlu0 %148 }
 0x109   :  { %151 = vst.msk [vmem:[%s303_s4] sm:$0xff] %vm150_vm2, %v149_v42 }
 0x10a   :  { %v160_v43 = vpop.xlane.xlu1 %159 }
 0x10b   :  { %161 = vst.msk [vmem:[%s304_s5] sm:$0xff] %vm150_vm2, %v160_v43 }

// kernel: tile.6
= control target key start
LH: loop header
LB: loop body
LE: loop exit
PB: predicated region body
PF: predicated region fallthrough
CT: control target
= control target key end

     0   :  { %s22_s0 = inlined_call_operand.vmem [shape: f32[4], index: 0, kind: input, shape index: {}]   ;;  %s23_s1 = inlined_call_operand.vmem [shape: f32[4,4], index: 1, kind: output, shape index: {}]  }
   0x1   :  { %v4_v0 = vld [vmem:[%s22_s0] ss:$0 sm:$0xff] }
   0x2   :  { %5 = vst [vmem:[%s23_s1] sm:$0xf] %v4_v0 }

// kernel: tile.0
= control target key start
LH: loop header
LB: loop body
LE: loop exit
PB: predicated region body
PF: predicated region fallthrough
CT: control target
= control target key end

     0   :  { %s34_s8 = smov 125   ;;  %s35_s9 = smov 126   ;;  %vm7_vm0 = vcmask 7168   ;;  %s61_s0 = inlined_call_operand.vmem [shape: f32[4,4], index: 0, kind: input, shape index: {}]   ;;  %s62_s1 = inlined_call_operand.vmem [shape: f32[16,1], index: 1, kind: output, shape index: {}]  }
   0x1   :  { %v4_v0 = vld [vmem:[%s61_s0] sm:$0xf]  ;;  %s33_s0 = smov 127  }
   0x2   :  { %5 = vst [vmem:[#allocation0] sm:$0xf] %v4_v0 }
   0x9   :  { %v9_v1 = vld [vmem:[#allocation0] sm:$0xf]  }
   0xa   :  { %v21_v2 = vld [vmem:[#allocation0] sm:$0xf]   ;;  %10 = vrot.lane.b32.xlu0 %v9_v1, %s33_s0 }
   0xb   :  { %22 = vrot.lane.b32.xlu1 %v21_v2, %s34_s8  ;;  %v15_v3 = vld [vmem:[#allocation0] sm:$0xf]  }
   0xc   :  { %v6_v4 = vld [vmem:[#allocation0] sm:$0xf]  }
   0xd   :  { %8 = vst.msk [vmem:[%s62_s1] ss:$4 sm:$0xf] %vm7_vm0, %v6_v4  }
  0x12   :  { %16 = vrot.lane.b32.xlu0 %v15_v3, %s35_s9 }
  0x7c   :  { %v11_v5 = vpop.permute.xlu0 %10  }
  0x7d   :  { %v23_v6 = vpop.permute.xlu1 %22   ;;  %27 = vst.msk [vmem:[%s62_s1 + $0x1] ss:$4 sm:$0xf] %vm7_vm0, %v11_v5  }
  0x7e   :  { %29 = vst.msk [vmem:[%s62_s1 + $0x3] ss:$4 sm:$0xf] %vm7_vm0, %v23_v6  }
  0x84   :  { %v17_v7 = vpop.permute.xlu0 %16  }
  0x85   :  { %28 = vst.msk [vmem:[%s62_s1 + $0x2] ss:$4 sm:$0xf] %vm7_vm0, %v17_v7  }

// kernel: upconv_forward.6
= control target key start
LH: loop header
LB: loop body
LE: loop exit
PB: predicated region body
PF: predicated region fallthrough
CT: control target
= control target key end

     0   :  { %v183_v3 = vmov 0   ;;  %vm60_vm0 = vcmask 588800   ;;  %vm153_vm1 = vcmask 7168   ;;  %s346_s0 = inlined_call_operand.vmem [shape: f32[72,512], index: 0, kind: input, shape index: {}]   ;;  %s347_s1 = inlined_call_operand.vmem [shape: f32[8,72], index: 1, kind: input, shape index: {}]   ;;  %s348_s2 = inlined_call_operand.vmem [shape: f32[8,1], index: 2, kind: input, shape index: {}]   ;;  %s349_s3 = inlined_call_operand.vmem [shape: f32[8,512], index: 3, kind: output, shape index: {0}]   ;;  %s350_s4 = inlined_call_operand.vmem [shape: f32[1,8,1], index: 4, kind: output, shape index: {1}]   ;;  %s351_s5 = inlined_call_operand.vmem [shape: f32[1,8,1], index: 5, kind: output, shape index: {2}]  }
   0x1   :  { %v52_v0 = vld [vmem:[%s346_s0 + $0x110] sm:$0xff]  ;;  %v53_v1 = vld [vmem:[%s346_s0 + $0x118] sm:$0xff]  ;;  %182 = vset.pattern.permute.xlu0 %v183_v3  ;;  %v50_v5 = vld [vmem:[%s346_s0 + $0x100] sm:$0xff] }
   0x2   :  { %v48_v2 = vld [vmem:[%s346_s0 + $0xf0] sm:$0xff]  ;;  %111 = vmatpush.msra.mxu2 %v52_v0  ;;  %131 = vmatpush.msra.mxu3 %v53_v1  ;;  %v49_v4 = vld [vmem:[%s346_s0 + $0xf8] sm:$0xff]  ;;  %v51_v6 = vld [vmem:[%s346_s0 + $0x108] sm:$0xff] }
   0x3   :  { %71 = vmatpush.msra.mxu0 %v50_v5  ;;  %91 = vmatpush.msra.mxu1 %v51_v6  ;;  %v44_v7 = vld [vmem:[%s346_s0 + $0xd0] sm:$0xff]  ;;  %v45_v8 = vld [vmem:[%s346_s0 + $0xd8] sm:$0xff]  ;;  %v46_v9 = vld [vmem:[%s346_s0 + $0xe0] sm:$0xff] }
   0x4   :  { %112 = vmatpush.msra.mxu2 %v48_v2  ;;  %132 = vmatpush.msra.mxu3 %v49_v4  ;;  %v47_v10 = vld [vmem:[%s346_s0 + $0xe8] sm:$0xff]  ;;  %v40_v11 = vld [vmem:[%s346_s0 + $0xb0] sm:$0xff]  ;;  %v41_v12 = vld [vmem:[%s346_s0 + $0xb8] sm:$0xff] }
   0x5   :  { %72 = vmatpush.msra.mxu0 %v46_v9  ;;  %92 = vmatpush.msra.mxu1 %v47_v10  ;;  %v42_v13 = vld [vmem:[%s346_s0 + $0xc0] sm:$0xff]  ;;  %v43_v14 = vld [vmem:[%s346_s0 + $0xc8] sm:$0xff]  ;;  %v36_v17 = vld [vmem:[%s346_s0 + $0x90] sm:$0xff] }
   0x6   :  { %113 = vmatpush.msra.mxu2 %v44_v7  ;;  %133 = vmatpush.msra.mxu3 %v45_v8  ;;  %v38_v15 = vld [vmem:[%s346_s0 + $0xa0] sm:$0xff]  ;;  %v39_v16 = vld [vmem:[%s346_s0 + $0xa8] sm:$0xff]  ;;  %v37_v18 = vld [vmem:[%s346_s0 + $0x98] sm:$0xff] }
   0x7   :  { %73 = vmatpush.msra.mxu0 %v42_v13  ;;  %93 = vmatpush.msra.mxu1 %v43_v14  ;;  %v34_v19 = vld [vmem:[%s346_s0 + $0x80] sm:$0xff]  ;;  %v35_v20 = vld [vmem:[%s346_s0 + $0x88] sm:$0xff]  ;;  %v32_v21 = vld [vmem:[%s346_s0 + $0x70] sm:$0xff] }
   0x8   :  { %114 = vmatpush.msra.mxu2 %v40_v11  ;;  %134 = vmatpush.msra.mxu3 %v41_v12  ;;  %v33_v22 = vld [vmem:[%s346_s0 + $0x78] sm:$0xff]  ;;  %v30_v23 = vld [vmem:[%s346_s0 + $0x60] sm:$0xff]  ;;  %v31_v24 = vld [vmem:[%s346_s0 + $0x68] sm:$0xff] }
   0x9   :  { %74 = vmatpush.msra.mxu0 %v38_v15  ;;  %94 = vmatpush.msra.mxu1 %v39_v16  ;;  %v28_v25 = vld [vmem:[%s346_s0 + $0x50] sm:$0xff]  ;;  %v29_v26 = vld [vmem:[%s346_s0 + $0x58] sm:$0xff]  ;;  %v26_v27 = vld [vmem:[%s346_s0 + $0x40] sm:$0xff] }
   0xa   :  { %115 = vmatpush.msra.mxu2 %v36_v17  ;;  %135 = vmatpush.msra.mxu3 %v37_v18  ;;  %v27_v28 = vld [vmem:[%s346_s0 + $0x48] sm:$0xff]  ;;  %v24_v29 = vld [vmem:[%s346_s0 + $0x30] sm:$0xff]  ;;  %v25_v30 = vld [vmem:[%s346_s0 + $0x38] sm:$0xff] }
   0xb   :  { %75 = vmatpush.msra.mxu0 %v34_v19  ;;  %95 = vmatpush.msra.mxu1 %v35_v20  ;;  %v22_v31 = vld [vmem:[%s346_s0 + $0x20] sm:$0xff]  ;;  %v23_v32 = vld [vmem:[%s346_s0 + $0x28] sm:$0xff]  ;;  %v20_v33 = vld [vmem:[%s346_s0 + $0x10] sm:$0xff] }
   0xc   :  { %116 = vmatpush.msra.mxu2 %v32_v21  ;;  %136 = vmatpush.msra.mxu3 %v33_v22  ;;  %v21_v34 = vld [vmem:[%s346_s0 + $0x18] sm:$0xff]  ;;  %v17_v35 = vld [vmem:[%s347_s1] sm:$0xff]  ;;  %v19_v37 = vld [vmem:[%s346_s0 + $0x8] sm:$0xff] }
   0xd   :  { %76 = vmatpush.msra.mxu0 %v30_v23  ;;  %96 = vmatpush.msra.mxu1 %v31_v24  ;;  %v18_v36 = vld [vmem:[%s346_s0] sm:$0xff] }
   0xe   :  { %117 = vmatpush.msra.mxu2 %v28_v25  ;;  %137 = vmatpush.msra.mxu3 %v29_v26  ;;  %v54_v38 = vld [vmem:[%s348_s2] sm:$0xff] }
   0xf   :  { %77 = vmatpush.msra.mxu0 %v26_v27  ;;  %97 = vmatpush.msra.mxu1 %v27_v28 }
  0x10   :  { %118 = vmatpush.msra.mxu2 %v24_v29  ;;  %138 = vmatpush.msra.mxu3 %v25_v30 }
  0x11   :  { %78 = vmatpush.msra.mxu0 %v22_v31  ;;  %98 = vmatpush.msra.mxu1 %v23_v32 }
  0x12   :  { %119 = vmatpush.msra.mxu2 %v20_v33  ;;  %139 = vmatpush.msra.mxu3 %v21_v34 }
  0x13   :  { %179 = vmatmul.msk.f32.vlgmr.msra.gmra.mxu2 %vm60_vm0, %v17_v35  ;;  %180 = vmatmul.msk.f32.vlgmr.msra.gmra.mxu3 %vm60_vm0, %v17_v35 }
  0x14   :  { %79 = vmatpush.msra.mxu0 %v18_v36  ;;  %99 = vmatpush.msra.mxu1 %v19_v37 }
  0x15   :  { %177 = vmatmul.msk.f32.vlgmr.msra.gmra.mxu0 %vm60_vm0, %v17_v35  ;;  %178 = vmatmul.msk.f32.vlgmr.msra.gmra.mxu1 %vm60_vm0, %v17_v35 }
  0x16   :  { %57 = vperm.xlu0 %182, %v54_v38  }
  0x88   :  { %v58_v39 = vpop.permute.xlu0 %57 }
  0x92   :  { %v81_v40 = vpop.f32.mrf.mxu0  ;;  %v101_v41 = vpop.f32.mrf.mxu1 }
  0x93   :  { %v82_v42 = vadd.f32 %v81_v40, %v58_v39  ;;  %v102_v43 = vadd.f32 %v101_v41, %v58_v39 }
  0x95   :  { %144 = vst [vmem:[%s349_s3] sm:$0xff] %v82_v42  ;;  %v155_v44 = vmul.f32 %v82_v42, %v82_v42  ;;  %v148_v45 = vadd.f32 %v102_v43, %v82_v42  ;;  %v156_v46 = vmul.f32 %v102_v43, %v102_v43 }
  0x96   :  { %145 = vst [vmem:[%s349_s3 + $0x8] sm:$0xff] %v102_v43  ;;  %v121_v47 = vpop.f32.mrf.mxu2  ;;  %v141_v48 = vpop.f32.mrf.mxu3 }
  0x97   :  { %v122_v49 = vadd.f32 %v121_v47, %v58_v39  ;;  %v142_v50 = vadd.f32 %v141_v48, %v58_v39  ;;  %v159_v51 = vadd.f32 %v156_v46, %v155_v44 }
  0x99   :  { %146 = vst [vmem:[%s349_s3 + $0x10] sm:$0xff] %v122_v49  ;;  %v149_v52 = vadd.f32 %v148_v45, %v122_v49  ;;  %v157_v53 = vmul.f32 %v122_v49, %v122_v49  ;;  %v158_v55 = vmul.f32 %v142_v50, %v142_v50 }
  0x9a   :  { %147 = vst [vmem:[%s349_s3 + $0x18] sm:$0xff] %v142_v50 }
  0x9b   :  { %v150_v54 = vadd.f32 %v149_v52, %v142_v50  ;;  %v160_v56 = vadd.f32 %v159_v51, %v157_v53 }
  0x9d   :  { %151 = vadd.xlane.f32.xlu0 %v150_v54  ;;  %v161_v57 = vadd.f32 %v160_v56, %v158_v55 }
  0x9f   :  { %162 = vadd.xlane.f32.xlu1 %v161_v57 }
 0x110   :  { %v152_v58 = vpop.xlane.xlu0 %151 }
 0x111   :  { %154 = vst.msk [vmem:[%s350_s4] sm:$0xff] %vm153_vm1, %v152_v58 }
 0x112   :  { %v163_v59 = vpop.xlane.xlu1 %162 }
 0x113   :  { %164 = vst.msk [vmem:[%s351_s5] sm:$0xff] %vm153_vm1, %v163_v59 }

// kernel: upconv_forward.7
= control target key start
LH: loop header
LB: loop body
LE: loop exit
PB: predicated region body
PF: predicated region fallthrough
CT: control target
= control target key end

     0   :  { %v184_v0 = vmov 0   ;;  %vm62_vm0 = vcmask 64512   ;;  %s269_s1 = inlined_call_operand.vmem [shape: f32[8,1], index: 1, kind: input, shape index: {}]   ;;  %s270_s2 = inlined_call_operand.vmem [shape: f32[8,1], index: 2, kind: input, shape index: {}]   ;;  %s271_s4 = inlined_call_operand.vmem [shape: f32[16,1], index: 4, kind: input, shape index: {}]   ;;  %s272_s0 = inlined_call_operand.vmem [shape: f32[8,512], index: 0, kind: input, shape index: {}]   ;;  %s273_s3 = inlined_call_operand.vmem [shape: f32[16,8], index: 3, kind: input, shape index: {}]   ;;  %s274_s5 = inlined_call_operand.vmem [shape: f32[16,512], index: 5, kind: output, shape index: {}]  }
   0x1   :  { %182 = vset.pattern.permute.xlu0 %v184_v0  ;;  %v24_v1 = vld [vmem:[%s269_s1] sm:$0xff]  ;;  %183 = vset.pattern.permute.xlu1 %v184_v0  ;;  %v51_v4 = vld [vmem:[%s271_s4 + $0x8] sm:$0xff]  ;;  %v22_v8 = vld [vmem:[%s272_s0 + $0x10] sm:$0xff] }
   0x2   :  { %27 = vperm.xlu0 %182, %v24_v1   ;;  %v34_v2 = vld [vmem:[%s270_s2] sm:$0xff]  ;;  %v21_v7 = vld [vmem:[%s272_s0 + $0x8] sm:$0xff]  ;;  %v23_v9 = vld [vmem:[%s272_s0 + $0x18] sm:$0xff] }
   0x3   :  { %v50_v3 = vld [vmem:[%s271_s4] sm:$0xff]  ;;  %v49_v24 = vld [vmem:[%s273_s3 + $0x8] sm:$0xff] }
   0x4   :  { %54 = vperm.xlu1 %183, %v50_v3   ;;  %v20_v6 = vld [vmem:[%s272_s0] sm:$0xff] }
   0x5   :  { %v48_v23 = vld [vmem:[%s273_s3] sm:$0xff] }
   0xa   :  { %37 = vperm.xlu0 %182, %v34_v2  }
   0xc   :  { %59 = vperm.xlu1 %183, %v51_v4  }
  0x74   :  { %v28_v5 = vpop.permute.xlu0 %27 }
  0x75   :  { %v30_v10 = vmul.f32 %v28_v5, %v20_v6  ;;  %v31_v11 = vmul.f32 %v28_v5, %v21_v7  ;;  %v32_v12 = vmul.f32 %v28_v5, %v22_v8  ;;  %v33_v13 = vmul.f32 %v28_v5, %v23_v9 }
  0x76   :  { %v55_v25 = vpop.permute.xlu1 %54 }
  0x7c   :  { %v38_v14 = vpop.permute.xlu0 %37 }
  0x7d   :  { %v40_v15 = vadd.f32 %v38_v14, %v30_v10  ;;  %v41_v16 = vadd.f32 %v38_v14, %v31_v11  ;;  %v42_v17 = vadd.f32 %v38_v14, %v32_v12  ;;  %v43_v18 = vadd.f32 %v38_v14, %v33_v13 }
  0x7e   :  { %v60_v30 = vpop.permute.xlu1 %59 }
  0x7f   :  { %v44_v19 = vmax.f32 %v40_v15, 0.0  ;;  %v45_v20 = vmax.f32 %v41_v16, 0.0  ;;  %v46_v21 = vmax.f32 %v42_v17, 0.0  ;;  %v47_v22 = vmax.f32 %v43_v18, 0.0 }
  0x81   :  { %84 = vmatpush.msra.mxu0 %v44_v19  ;;  %107 = vmatpush.msra.mxu1 %v45_v20 }
  0x82   :  { %130 = vmatpush.msra.mxu2 %v46_v21  ;;  %153 = vmatpush.msra.mxu3 %v47_v22 }
  0x83   :  { %173 = vmatmul.msk.f32.vlgmr.msra.gmra.mxu0 %vm62_vm0, %v48_v23  ;;  %175 = vmatmul.msk.f32.vlgmr.msra.gmra.mxu1 %vm62_vm0, %v48_v23 }
  0x84   :  { %177 = vmatmul.msk.f32.vlgmr.msra.gmra.mxu2 %vm62_vm0, %v48_v23  ;;  %179 = vmatmul.msk.f32.vlgmr.msra.gmra.mxu3 %vm62_vm0, %v48_v23 }
  0x8b   :  { %174 = vmatmul.msk.f32.gmra.mxu0 %vm62_vm0, %v49_v24  ;;  %176 = vmatmul.msk.f32.gmra.mxu1 %vm62_vm0, %v49_v24 }
  0x8c   :  { %178 = vmatmul.msk.f32.gmra.mxu2 %vm62_vm0, %v49_v24  ;;  %180 = vmatmul.msk.f32.gmra.mxu3 %vm62_vm0, %v49_v24 }
 0x100   :  { %v86_v26 = vpop.f32.mrf.mxu0  ;;  %v109_v27 = vpop.f32.mrf.mxu1 }
 0x101   :  { %v87_v28 = vadd.f32 %v86_v26, %v55_v25  ;;  %v110_v29 = vadd.f32 %v109_v27, %v55_v25 }
 0x103   :  { %161 = vst [vmem:[%s274_s5] sm:$0xff] %v87_v28 }
 0x104   :  { %162 = vst [vmem:[%s274_s5 + $0x8] sm:$0xff] %v110_v29 }
 0x107   :  { %v132_v31 = vpop.f32.mrf.mxu2  ;;  %v155_v32 = vpop.f32.mrf.mxu3 }
 0x108   :  { %v133_v33 = vadd.f32 %v132_v31, %v55_v25  ;;  %v156_v34 = vadd.f32 %v155_v32, %v55_v25  ;;  %v89_v35 = vpop.f32.mrf.mxu0  ;;  %v112_v36 = vpop.f32.mrf.mxu1 }
 0x109   :  { %v90_v37 = vadd.f32 %v89_v35, %v60_v30  ;;  %v113_v38 = vadd.f32 %v112_v36, %v60_v30 }
 0x10a   :  { %163 = vst [vmem:[%s274_s5 + $0x10] sm:$0xff] %v133_v33 }
 0x10b   :  { %164 = vst [vmem:[%s274_s5 + $0x18] sm:$0xff] %v156_v34 }
 0x10c   :  { %165 = vst [vmem:[%s274_s5 + $0x20] sm:$0xff] %v90_v37 }
 0x10d   :  { %166 = vst [vmem:[%s274_s5 + $0x28] sm:$0xff] %v113_v38 }
 0x10f   :  { %v135_v39 = vpop.f32.mrf.mxu2  ;;  %v158_v40 = vpop.f32.mrf.mxu3 }
 0x110   :  { %v136_v41 = vadd.f32 %v135_v39, %v60_v30  ;;  %v159_v42 = vadd.f32 %v158_v40, %v60_v30 }
 0x112   :  { %167 = vst [vmem:[%s274_s5 + $0x30] sm:$0xff] %v136_v41 }
 0x113   :  { %168 = vst [vmem:[%s274_s5 + $0x38] sm:$0xff] %v159_v42 }

</bundles_post_ra>
